<compile_context>
chip_gen: v7x
topology: tpu7x:2x2x1
jax: 0.10.0
libtpu: 0.0.40
codegen_flags: <defaults>
</compile_context>

<pallas_src>
import math

import jax
import jax.numpy as jnp
from jax import lax
from jax.experimental import pallas as pl
from jax.experimental.pallas import tpu as pltpu

# ----------------------------- config ---------------------------------------
COMPUTE_DTYPE = jnp.bfloat16   # MXU input dtype (f32 accumulation everywhere)
APPROX_GELU = True             # tanh GELU on the EUP; False -> exact erf (nn.GELU default)
LANE = 128                     # TPU lane width


def _round_up(v, m):
    return ((v + m - 1) // m) * m


def _auto_carry_dtype():
    """bf16 elementwise (VPU/EUP) exists on v6e and later; keep f32 on v5e/older."""
    try:
        kind = jax.devices()[0].device_kind.lower()
    except Exception:
        return jnp.float32
    for tag in ("v2", "v3", "v4", "v5"):
        if tag in kind:
            return jnp.float32
    return jnp.bfloat16


def _gelu(x, approximate):
    if approximate:
        c = jnp.asarray(math.sqrt(2.0 / math.pi), x.dtype)
        return (0.5 * x) * (1.0 + jnp.tanh(c * (x + 0.044715 * (x * x * x))))
    # exact erf path computed in f32 for safety, cast back to the carry dtype
    x32 = x.astype(jnp.float32)
    y = 0.5 * x32 * (1.0 + lax.erf(x32 * jnp.float32(1.0 / math.sqrt(2.0))))
    return y.astype(x.dtype)


# ----------------------------- kernel ----------------------------------------

def _make_backbone_kernel(n1, n2, compute_dtype, carry_dtype, approx_gelu):
    """n1 / n2 = number of Linear layers in MLP1 / MLP2 (== num_layer + 2 each)."""

    def kernel(idx_ref, x_ref, emb_ref, w_ref, b_ref, out_ref):
        del idx_ref  # embedding row already selected via the emb index_map
        b_all = b_ref[...]                      # (L, Hp) f32, tiny -> resident

        def layer(h, li):
            # bf16 MXU matmul with f32 accumulation; bias add in f32.
            return (jnp.dot(h.astype(compute_dtype), w_ref[li],
                            preferred_element_type=jnp.float32)
                    + b_all[li])

        def act(y):
            # elementwise GELU (and the residual adds below) in the carry dtype:
            # bf16 on v6e/v7x halves VPU work + vreg pressure, f32 on v5e.
            return _gelu(y.astype(carry_dtype), approx_gelu)

        h = x_ref[...].astype(carry_dtype)

        # ---- backbone.linear_model1 ----
        h = act(layer(h, 0))                                  # first: gelu(linear)
        for li in range(1, n1 - 1):                           # middle: residual + gelu
            h = h + act(layer(h, li))
        h = layer(h, n1 - 1)                                  # last: plain linear (f32)

        # ---- + embedding_layer(idx) ----
        h = (h + emb_ref[0]).astype(carry_dtype)              # (1, Hp) broadcast

        # ---- backbone.linear_model2 ----
        h = act(layer(h, n1))
        for li in range(n1 + 1, n1 + n2 - 1):
            h = h + act(layer(h, li))
        out_ref[...] = layer(h, n1 + n2 - 1).astype(out_ref.dtype)

    return kernel


# -------------------------- one-time parameter packing -----------------------

def pack_params(params1, params2, emb_table, *, compute_dtype=COMPUTE_DTYPE,
                carry_dtype=None, approx_gelu=APPROX_GELU):
    """Hoisted out of the forward path: stack every Linear of both MLPs into one
    [L, Hp, Hp] weight tensor (compute dtype) and one [L, Hp] f32 bias tensor.
    Hp = round_up(max(dim_in, dim_hidden), 128) so every block is lane-dense and
    all layers share one shape; zero pad rows/cols + gelu(0)=0 keep the valid
    region exact."""
    if carry_dtype is None:
        carry_dtype = _auto_carry_dtype()
    n1, n2 = len(params1), len(params2)
    dim_in = params1[0][0].shape[0]
    dim_hidden = params1[0][0].shape[1]
    hp = _round_up(max(dim_in, dim_hidden), LANE)

    def pad_w(w):
        return jnp.pad(w, ((0, hp - w.shape[0]), (0, hp - w.shape[1])))

    def pad_b(b):
        return jnp.pad(b, (0, hp - b.shape[0]))

    layers = list(params1) + list(params2)
    w_stack = jnp.stack([pad_w(w) for (w, _) in layers]).astype(compute_dtype)
    b_stack = jnp.stack([pad_b(b) for (_, b) in layers]).astype(jnp.float32)
    n_steps = emb_table.shape[0]
    emb = jnp.pad(emb_table.astype(jnp.float32),
                  ((0, 0), (0, hp - emb_table.shape[1]))).reshape(n_steps, 1, hp)
    return dict(w_stack=w_stack, b_stack=b_stack, emb=emb,
                n1=n1, n2=n2, dim_in=dim_in, hp=hp,
                compute_dtype=compute_dtype, carry_dtype=carry_dtype,
                approx_gelu=approx_gelu)


# ------------------------------ forward wrapper -------------------------------

def _choose_tile(B, block_b):
    """Batch tile: one whole-array tile for small B; otherwise a multiple of 8,
    with an even tile count so v7x's two TensorCores split the 'parallel' axis."""
    if B <= block_b:
        return B
    n = max(2, -(-B // block_b))
    if n % 2:
        n += 1
    tb = _round_up(-(-B // n), 8)
    return min(tb, block_b)


def backbone_pallas(x, idx, packed, *, block_b=4096):
    """Backbone.forward(x, idx) with a scalar diffusion step `idx`.
    x: [B, dim_in].  Returns [B, dim_in] f32."""
    w_stack, b_stack, emb = packed["w_stack"], packed["b_stack"], packed["emb"]
    n1, n2, D, Hp = packed["n1"], packed["n2"], packed["dim_in"], packed["hp"]
    L = n1 + n2
    B = x.shape[0]

    TB = _choose_tile(B, block_b)
    num_tiles = -(-B // TB)

    # Only the feature dim is padded (lane-dense); no host-side batch pad — the
    # last partial batch block is handled by the pipeline (OOB writes dropped).
    xp = x.astype(jnp.float32)
    if Hp != D:
        xp = jnp.pad(xp, ((0, 0), (0, Hp - D)))

    idx_arr = jnp.asarray([idx], dtype=jnp.int32)  # scalar prefetch -> SMEM

    kernel = _make_backbone_kernel(n1, n2, packed["compute_dtype"],
                                   packed["carry_dtype"], packed["approx_gelu"])
    out = pl.pallas_call(
        kernel,
        out_shape=jax.ShapeDtypeStruct((B, Hp), jnp.float32),
        grid_spec=pltpu.PrefetchScalarGridSpec(
            num_scalar_prefetch=1,
            grid=(num_tiles,),
            in_specs=[
                pl.BlockSpec((TB, Hp), lambda i, idx_ref: (i, 0)),                # x tile
                pl.BlockSpec((1, 1, Hp), lambda i, idx_ref: (idx_ref[0], 0, 0)),  # emb row (fused gather)
                pl.BlockSpec((L, Hp, Hp), lambda i, idx_ref: (0, 0, 0)),          # stacked weights (resident)
                pl.BlockSpec((L, Hp), lambda i, idx_ref: (0, 0)),                 # stacked biases (resident)
            ],
            out_specs=pl.BlockSpec((TB, Hp), lambda i, idx_ref: (i, 0)),
        ),
        compiler_params=pltpu.CompilerParams(
            dimension_semantics=("parallel",),
            vmem_limit_bytes=32 * 1024 * 1024),  # lift v5e's 16 MiB scoped default
    )(idx_arr, xp, emb, w_stack, b_stack)
    return out[:, :D]


# ------------------------- parameter construction -----------------------------

def init_linear(key, fan_in, fan_out):
    """PyTorch nn.Linear default init (uniform +-1/sqrt(fan_in)); weight stored [in, out]."""
    k1, k2 = jax.random.split(key)
    bound = 1.0 / math.sqrt(fan_in)
    w = jax.random.uniform(k1, (fan_in, fan_out), minval=-bound, maxval=bound,
                           dtype=jnp.float32)
    b = jax.random.uniform(k2, (fan_out,), minval=-bound, maxval=bound,
                           dtype=jnp.float32)
    return w, b


def init_mlp(key, dim_in, dim_hidden, dim_out, num_layer):
    dims = [(dim_in, dim_hidden)] + [(dim_hidden, dim_hidden)] * num_layer + \
           [(dim_hidden, dim_out)]
    keys = jax.random.split(key, len(dims))
    return [init_linear(k, di, do) for k, (di, do) in zip(keys, dims)]


# ------------------------- pure-JAX references --------------------------------

def mlp_ref(h, params, *, approx=False, compute_dtype=None, carry_dtype=None):
    n = len(params)
    exact = compute_dtype is None
    cd = jnp.float32 if carry_dtype is None else carry_dtype
    if not exact:
        h = h.astype(cd)
    for i, (w, b) in enumerate(params):
        if exact:
            y = jnp.dot(h, w, precision=lax.Precision.HIGHEST) + b
        else:
            y = jnp.dot(h.astype(compute_dtype), w.astype(compute_dtype),
                        preferred_element_type=jnp.float32) + b
        if i == 0:
            h = _gelu(y if exact else y.astype(cd), approx)
        elif i == n - 1:
            h = y
        else:
            h = h + _gelu(y if exact else y.astype(cd), approx)
    return h


def model_forward_ref(x, idx_arr, emb_table, params1, params2, *,
                      approx=False, compute_dtype=None, carry_dtype=None):
    emb = emb_table[idx_arr]
    h = mlp_ref(x, params1, approx=approx, compute_dtype=compute_dtype,
                carry_dtype=carry_dtype) + emb
    return mlp_ref(h, params2, approx=approx, compute_dtype=compute_dtype,
                   carry_dtype=carry_dtype)


# ------------------------------------ main ------------------------------------

if __name__ == "__main__":
    # Model hyper-parameters (small, consistent with the module)
    dim_in, dim_hidden, num_layer = 4, 32, 2
    T, beta_1, beta_T = 100, 1e-4, 0.02
    B = 8

    # diffusion-schedule buffers (registered in __init__, unused on this path)
    beta = jnp.linspace(beta_1, beta_T, T)
    alpha_bars = jnp.cumprod(1.0 - beta)
    snr = (1.0 - alpha_bars) / alpha_bars  # noqa: F841

    key = jax.random.PRNGKey(0)
    k_x, k_m1, k_m2, k_emb, k_x2 = jax.random.split(key, 5)

    x = jax.random.normal(k_x, (B, dim_in), dtype=jnp.float32)
    params1 = init_mlp(k_m1, dim_in, dim_hidden, dim_hidden, num_layer)
    params2 = init_mlp(k_m2, dim_hidden, dim_hidden, dim_in, num_layer)
    emb_table = jax.random.normal(k_emb, (T, dim_hidden), dtype=jnp.float32)

    packed = pack_params(params1, params2, emb_table)   # one-time pack / bf16 cast

    # forward(x, idx=10): idx broadcast to every batch row, x_tilde = x
    idx = 10
    out = jax.block_until_ready(backbone_pallas(x, idx, packed))
    assert out.shape == (B, dim_in)

    idx_arr = jnp.full((B,), idx, dtype=jnp.int32)
    cd = packed["compute_dtype"]
    carry = packed["carry_dtype"]
    matched_compute = None if cd == jnp.float32 else cd

    # precision-matched reference (same bf16 casts / carry dtype / GELU variant)
    ref_matched = model_forward_ref(x, idx_arr, emb_table, params1, params2,
                                    approx=packed["approx_gelu"],
                                    compute_dtype=matched_compute,
                                    carry_dtype=carry)
    # exact f32 / erf-GELU reference (the PyTorch module's math) -> loose drift bound
    ref_exact = model_forward_ref(x, idx_arr, emb_table, params1, params2)

    matched_tol = 1e-3 if carry == jnp.float32 else 5e-2
    exact_tol = 1e-4 if (cd == jnp.float32 and carry == jnp.float32
                         and not packed["approx_gelu"]) else 2e-1
    assert jnp.max(jnp.abs(out - ref_matched)) < matched_tol, "mismatch vs matched reference"
    assert jnp.max(jnp.abs(out - ref_exact)) < exact_tol, "drift vs exact reference"

    # second check: multi-tile batch grid with a partial last block (no batch pad)
    B2 = 1000
    x2 = jax.random.normal(k_x2, (B2, dim_in), dtype=jnp.float32)
    out2 = jax.block_until_ready(backbone_pallas(x2, idx, packed, block_b=256))
    assert out2.shape == (B2, dim_in)
    idx_arr2 = jnp.full((B2,), idx, dtype=jnp.int32)
    ref2 = model_forward_ref(x2, idx_arr2, emb_table, params1, params2,
                             approx=packed["approx_gelu"],
                             compute_dtype=matched_compute, carry_dtype=carry)
    assert jnp.max(jnp.abs(out2 - ref2)) < matched_tol, "tiled-batch mismatch"

    print("KERNEL_OK")
</pallas_src>

<mosaic_0001>
module attributes {stable_mosaic.version = 11 : i64} {
  func.func @kernel(%arg0: i32, %arg1: memref<1xi32, #tpu.memory_space<smem>>, %arg2: memref<8x128xf32, #tpu.memory_space<vmem>>, %arg3: memref<1x1x128xf32, #tpu.memory_space<vmem>>, %arg4: memref<8x128x128xbf16, #tpu.memory_space<vmem>>, %arg5: memref<8x128xf32, #tpu.memory_space<vmem>>, %arg6: memref<8x128xf32, #tpu.memory_space<vmem>>) attributes {dimension_semantics = [#tpu.dimension_semantics<parallel>], iteration_bounds = array<i64: 1>, scalar_prefetch = 1 : i64, scratch_operands = 0 : i64, tpu.core_type = #tpu.core_type<tc>, window_params = [{transform_indices = @transform_0, window_bounds = array<i64: 8, 128>}, {transform_indices = @transform_1, window_bounds = array<i64: 1, 1, 128>}, {pipeline_mode = #tpu.pipeline_mode<synchronous>, transform_indices = @transform_2, window_bounds = array<i64: 8, 128, 128>}, {pipeline_mode = #tpu.pipeline_mode<synchronous>, transform_indices = @transform_3, window_bounds = array<i64: 8, 128>}, {transform_indices = @transform_4, window_bounds = array<i64: 8, 128>}]} {
    %c0 = arith.constant 0 : index
    %c0_0 = arith.constant 0 : index
    %0 = vector.load %arg5[%c0, %c0_0] : memref<8x128xf32, #tpu.memory_space<vmem>>, vector<8x128xf32>
    %c0_1 = arith.constant 0 : index
    %c0_2 = arith.constant 0 : index
    %1 = vector.load %arg2[%c0_1, %c0_2] : memref<8x128xf32, #tpu.memory_space<vmem>>, vector<8x128xf32>
    %2 = arith.truncf %1 : vector<8x128xf32> to vector<8x128xbf16>
    %c0_3 = arith.constant 0 : index
    %c0_4 = arith.constant 0 : index
    %c0_5 = arith.constant 0 : index
    %3 = vector.load %arg4[%c0_3, %c0_4, %c0_5] : memref<8x128x128xbf16, #tpu.memory_space<vmem>>, vector<1x128x128xbf16>
    %4 = vector.shape_cast %3 : vector<1x128x128xbf16> to vector<128x128xbf16>
    %cst = arith.constant dense<0.000000e+00> : vector<8x128xf32>
    %5 = tpu.matmul %2, %4, %cst {dimension_numbers = #tpu.dot_dimension_numbers<[1], [0], [0], [1], [0, 0, 1, 1], [], []>} : vector<8x128xbf16>, vector<128x128xbf16>, vector<8x128xf32> -> vector<8x128xf32>
    %6 = vector.extract_strided_slice %0 {offsets = [0, 0], sizes = [1, 128], strides = [1, 1]} : vector<8x128xf32> to vector<1x128xf32>
    %7 = vector.shape_cast %6 : vector<1x128xf32> to vector<128xf32>
    %8 = vector.shape_cast %7 : vector<128xf32> to vector<1x128xf32>
    %9 = vector.broadcast %8 : vector<1x128xf32> to vector<8x128xf32>
    %10 = arith.addf %5, %9 : vector<8x128xf32>
    %11 = arith.truncf %10 : vector<8x128xf32> to vector<8x128xbf16>
    %cst_6 = arith.constant 5.000000e-01 : bf16
    %12 = vector.broadcast %cst_6 : bf16 to vector<8x128xbf16>
    %13 = arith.mulf %12, %11 : vector<8x128xbf16>
    %14 = arith.mulf %11, %11 : vector<8x128xbf16>
    %15 = arith.mulf %14, %11 : vector<8x128xbf16>
    %cst_7 = arith.constant 4.467770e-02 : bf16
    %16 = vector.broadcast %cst_7 : bf16 to vector<8x128xbf16>
    %17 = arith.mulf %16, %15 : vector<8x128xbf16>
    %18 = arith.addf %11, %17 : vector<8x128xbf16>
    %cst_8 = arith.constant 7.968750e-01 : bf16
    %19 = vector.broadcast %cst_8 : bf16 to vector<8x128xbf16>
    %20 = arith.mulf %19, %18 : vector<8x128xbf16>
    %21 = math.tanh %20 : vector<8x128xbf16>
    %cst_9 = arith.constant 1.000000e+00 : bf16
    %22 = vector.broadcast %cst_9 : bf16 to vector<8x128xbf16>
    %23 = arith.addf %22, %21 : vector<8x128xbf16>
    %24 = arith.mulf %13, %23 : vector<8x128xbf16>
    %c1 = arith.constant 1 : index
    %c0_10 = arith.constant 0 : index
    %c0_11 = arith.constant 0 : index
    %25 = vector.load %arg4[%c1, %c0_10, %c0_11] : memref<8x128x128xbf16, #tpu.memory_space<vmem>>, vector<1x128x128xbf16>
    %26 = vector.shape_cast %25 : vector<1x128x128xbf16> to vector<128x128xbf16>
    %cst_12 = arith.constant dense<0.000000e+00> : vector<8x128xf32>
    %27 = tpu.matmul %24, %26, %cst_12 {dimension_numbers = #tpu.dot_dimension_numbers<[1], [0], [0], [1], [0, 0, 1, 1], [], []>} : vector<8x128xbf16>, vector<128x128xbf16>, vector<8x128xf32> -> vector<8x128xf32>
    %28 = vector.extract_strided_slice %0 {offsets = [1, 0], sizes = [1, 128], strides = [1, 1]} : vector<8x128xf32> to vector<1x128xf32>
    %29 = vector.shape_cast %28 : vector<1x128xf32> to vector<128xf32>
    %30 = vector.shape_cast %29 : vector<128xf32> to vector<1x128xf32>
    %31 = vector.broadcast %30 : vector<1x128xf32> to vector<8x128xf32>
    %32 = arith.addf %27, %31 : vector<8x128xf32>
    %33 = arith.truncf %32 : vector<8x128xf32> to vector<8x128xbf16>
    %cst_13 = arith.constant 5.000000e-01 : bf16
    %34 = vector.broadcast %cst_13 : bf16 to vector<8x128xbf16>
    %35 = arith.mulf %34, %33 : vector<8x128xbf16>
    %36 = arith.mulf %33, %33 : vector<8x128xbf16>
    %37 = arith.mulf %36, %33 : vector<8x128xbf16>
    %cst_14 = arith.constant 4.467770e-02 : bf16
    %38 = vector.broadcast %cst_14 : bf16 to vector<8x128xbf16>
    %39 = arith.mulf %38, %37 : vector<8x128xbf16>
    %40 = arith.addf %33, %39 : vector<8x128xbf16>
    %cst_15 = arith.constant 7.968750e-01 : bf16
    %41 = vector.broadcast %cst_15 : bf16 to vector<8x128xbf16>
    %42 = arith.mulf %41, %40 : vector<8x128xbf16>
    %43 = math.tanh %42 : vector<8x128xbf16>
    %cst_16 = arith.constant 1.000000e+00 : bf16
    %44 = vector.broadcast %cst_16 : bf16 to vector<8x128xbf16>
    %45 = arith.addf %44, %43 : vector<8x128xbf16>
    %46 = arith.mulf %35, %45 : vector<8x128xbf16>
    %47 = arith.addf %24, %46 : vector<8x128xbf16>
    %c2 = arith.constant 2 : index
    %c0_17 = arith.constant 0 : index
    %c0_18 = arith.constant 0 : index
    %48 = vector.load %arg4[%c2, %c0_17, %c0_18] : memref<8x128x128xbf16, #tpu.memory_space<vmem>>, vector<1x128x128xbf16>
    %49 = vector.shape_cast %48 : vector<1x128x128xbf16> to vector<128x128xbf16>
    %cst_19 = arith.constant dense<0.000000e+00> : vector<8x128xf32>
    %50 = tpu.matmul %47, %49, %cst_19 {dimension_numbers = #tpu.dot_dimension_numbers<[1], [0], [0], [1], [0, 0, 1, 1], [], []>} : vector<8x128xbf16>, vector<128x128xbf16>, vector<8x128xf32> -> vector<8x128xf32>
    %51 = vector.extract_strided_slice %0 {offsets = [2, 0], sizes = [1, 128], strides = [1, 1]} : vector<8x128xf32> to vector<1x128xf32>
    %52 = vector.shape_cast %51 : vector<1x128xf32> to vector<128xf32>
    %53 = vector.shape_cast %52 : vector<128xf32> to vector<1x128xf32>
    %54 = vector.broadcast %53 : vector<1x128xf32> to vector<8x128xf32>
    %55 = arith.addf %50, %54 : vector<8x128xf32>
    %56 = arith.truncf %55 : vector<8x128xf32> to vector<8x128xbf16>
    %cst_20 = arith.constant 5.000000e-01 : bf16
    %57 = vector.broadcast %cst_20 : bf16 to vector<8x128xbf16>
    %58 = arith.mulf %57, %56 : vector<8x128xbf16>
    %59 = arith.mulf %56, %56 : vector<8x128xbf16>
    %60 = arith.mulf %59, %56 : vector<8x128xbf16>
    %cst_21 = arith.constant 4.467770e-02 : bf16
    %61 = vector.broadcast %cst_21 : bf16 to vector<8x128xbf16>
    %62 = arith.mulf %61, %60 : vector<8x128xbf16>
    %63 = arith.addf %56, %62 : vector<8x128xbf16>
    %cst_22 = arith.constant 7.968750e-01 : bf16
    %64 = vector.broadcast %cst_22 : bf16 to vector<8x128xbf16>
    %65 = arith.mulf %64, %63 : vector<8x128xbf16>
    %66 = math.tanh %65 : vector<8x128xbf16>
    %cst_23 = arith.constant 1.000000e+00 : bf16
    %67 = vector.broadcast %cst_23 : bf16 to vector<8x128xbf16>
    %68 = arith.addf %67, %66 : vector<8x128xbf16>
    %69 = arith.mulf %58, %68 : vector<8x128xbf16>
    %70 = arith.addf %47, %69 : vector<8x128xbf16>
    %c3 = arith.constant 3 : index
    %c0_24 = arith.constant 0 : index
    %c0_25 = arith.constant 0 : index
    %71 = vector.load %arg4[%c3, %c0_24, %c0_25] : memref<8x128x128xbf16, #tpu.memory_space<vmem>>, vector<1x128x128xbf16>
    %72 = vector.shape_cast %71 : vector<1x128x128xbf16> to vector<128x128xbf16>
    %cst_26 = arith.constant dense<0.000000e+00> : vector<8x128xf32>
    %73 = tpu.matmul %70, %72, %cst_26 {dimension_numbers = #tpu.dot_dimension_numbers<[1], [0], [0], [1], [0, 0, 1, 1], [], []>} : vector<8x128xbf16>, vector<128x128xbf16>, vector<8x128xf32> -> vector<8x128xf32>
    %74 = vector.extract_strided_slice %0 {offsets = [3, 0], sizes = [1, 128], strides = [1, 1]} : vector<8x128xf32> to vector<1x128xf32>
    %75 = vector.shape_cast %74 : vector<1x128xf32> to vector<128xf32>
    %76 = vector.shape_cast %75 : vector<128xf32> to vector<1x128xf32>
    %77 = vector.broadcast %76 : vector<1x128xf32> to vector<8x128xf32>
    %78 = arith.addf %73, %77 : vector<8x128xf32>
    %c0_27 = arith.constant 0 : index
    %c0_28 = arith.constant 0 : index
    %c0_29 = arith.constant 0 : index
    %79 = vector.load %arg3[%c0_27, %c0_28, %c0_29] : memref<1x1x128xf32, #tpu.memory_space<vmem>>, vector<1x1x128xf32>
    %80 = vector.shape_cast %79 : vector<1x1x128xf32> to vector<1x128xf32>
    %81 = vector.broadcast %80 : vector<1x128xf32> to vector<8x128xf32>
    %82 = arith.addf %78, %81 : vector<8x128xf32>
    %83 = arith.truncf %82 : vector<8x128xf32> to vector<8x128xbf16>
    %c4 = arith.constant 4 : index
    %c0_30 = arith.constant 0 : index
    %c0_31 = arith.constant 0 : index
    %84 = vector.load %arg4[%c4, %c0_30, %c0_31] : memref<8x128x128xbf16, #tpu.memory_space<vmem>>, vector<1x128x128xbf16>
    %85 = vector.shape_cast %84 : vector<1x128x128xbf16> to vector<128x128xbf16>
    %cst_32 = arith.constant dense<0.000000e+00> : vector<8x128xf32>
    %86 = tpu.matmul %83, %85, %cst_32 {dimension_numbers = #tpu.dot_dimension_numbers<[1], [0], [0], [1], [0, 0, 1, 1], [], []>} : vector<8x128xbf16>, vector<128x128xbf16>, vector<8x128xf32> -> vector<8x128xf32>
    %87 = vector.extract_strided_slice %0 {offsets = [4, 0], sizes = [1, 128], strides = [1, 1]} : vector<8x128xf32> to vector<1x128xf32>
    %88 = vector.shape_cast %87 : vector<1x128xf32> to vector<128xf32>
    %89 = vector.shape_cast %88 : vector<128xf32> to vector<1x128xf32>
    %90 = vector.broadcast %89 : vector<1x128xf32> to vector<8x128xf32>
    %91 = arith.addf %86, %90 : vector<8x128xf32>
    %92 = arith.truncf %91 : vector<8x128xf32> to vector<8x128xbf16>
    %cst_33 = arith.constant 5.000000e-01 : bf16
    %93 = vector.broadcast %cst_33 : bf16 to vector<8x128xbf16>
    %94 = arith.mulf %93, %92 : vector<8x128xbf16>
    %95 = arith.mulf %92, %92 : vector<8x128xbf16>
    %96 = arith.mulf %95, %92 : vector<8x128xbf16>
    %cst_34 = arith.constant 4.467770e-02 : bf16
    %97 = vector.broadcast %cst_34 : bf16 to vector<8x128xbf16>
    %98 = arith.mulf %97, %96 : vector<8x128xbf16>
    %99 = arith.addf %92, %98 : vector<8x128xbf16>
    %cst_35 = arith.constant 7.968750e-01 : bf16
    %100 = vector.broadcast %cst_35 : bf16 to vector<8x128xbf16>
    %101 = arith.mulf %100, %99 : vector<8x128xbf16>
    %102 = math.tanh %101 : vector<8x128xbf16>
    %cst_36 = arith.constant 1.000000e+00 : bf16
    %103 = vector.broadcast %cst_36 : bf16 to vector<8x128xbf16>
    %104 = arith.addf %103, %102 : vector<8x128xbf16>
    %105 = arith.mulf %94, %104 : vector<8x128xbf16>
    %c5 = arith.constant 5 : index
    %c0_37 = arith.constant 0 : index
    %c0_38 = arith.constant 0 : index
    %106 = vector.load %arg4[%c5, %c0_37, %c0_38] : memref<8x128x128xbf16, #tpu.memory_space<vmem>>, vector<1x128x128xbf16>
    %107 = vector.shape_cast %106 : vector<1x128x128xbf16> to vector<128x128xbf16>
    %cst_39 = arith.constant dense<0.000000e+00> : vector<8x128xf32>
    %108 = tpu.matmul %105, %107, %cst_39 {dimension_numbers = #tpu.dot_dimension_numbers<[1], [0], [0], [1], [0, 0, 1, 1], [], []>} : vector<8x128xbf16>, vector<128x128xbf16>, vector<8x128xf32> -> vector<8x128xf32>
    %109 = vector.extract_strided_slice %0 {offsets = [5, 0], sizes = [1, 128], strides = [1, 1]} : vector<8x128xf32> to vector<1x128xf32>
    %110 = vector.shape_cast %109 : vector<1x128xf32> to vector<128xf32>
    %111 = vector.shape_cast %110 : vector<128xf32> to vector<1x128xf32>
    %112 = vector.broadcast %111 : vector<1x128xf32> to vector<8x128xf32>
    %113 = arith.addf %108, %112 : vector<8x128xf32>
    %114 = arith.truncf %113 : vector<8x128xf32> to vector<8x128xbf16>
    %cst_40 = arith.constant 5.000000e-01 : bf16
    %115 = vector.broadcast %cst_40 : bf16 to vector<8x128xbf16>
    %116 = arith.mulf %115, %114 : vector<8x128xbf16>
    %117 = arith.mulf %114, %114 : vector<8x128xbf16>
    %118 = arith.mulf %117, %114 : vector<8x128xbf16>
    %cst_41 = arith.constant 4.467770e-02 : bf16
    %119 = vector.broadcast %cst_41 : bf16 to vector<8x128xbf16>
    %120 = arith.mulf %119, %118 : vector<8x128xbf16>
    %121 = arith.addf %114, %120 : vector<8x128xbf16>
    %cst_42 = arith.constant 7.968750e-01 : bf16
    %122 = vector.broadcast %cst_42 : bf16 to vector<8x128xbf16>
    %123 = arith.mulf %122, %121 : vector<8x128xbf16>
    %124 = math.tanh %123 : vector<8x128xbf16>
    %cst_43 = arith.constant 1.000000e+00 : bf16
    %125 = vector.broadcast %cst_43 : bf16 to vector<8x128xbf16>
    %126 = arith.addf %125, %124 : vector<8x128xbf16>
    %127 = arith.mulf %116, %126 : vector<8x128xbf16>
    %128 = arith.addf %105, %127 : vector<8x128xbf16>
    %c6 = arith.constant 6 : index
    %c0_44 = arith.constant 0 : index
    %c0_45 = arith.constant 0 : index
    %129 = vector.load %arg4[%c6, %c0_44, %c0_45] : memref<8x128x128xbf16, #tpu.memory_space<vmem>>, vector<1x128x128xbf16>
    %130 = vector.shape_cast %129 : vector<1x128x128xbf16> to vector<128x128xbf16>
    %cst_46 = arith.constant dense<0.000000e+00> : vector<8x128xf32>
    %131 = tpu.matmul %128, %130, %cst_46 {dimension_numbers = #tpu.dot_dimension_numbers<[1], [0], [0], [1], [0, 0, 1, 1], [], []>} : vector<8x128xbf16>, vector<128x128xbf16>, vector<8x128xf32> -> vector<8x128xf32>
    %132 = vector.extract_strided_slice %0 {offsets = [6, 0], sizes = [1, 128], strides = [1, 1]} : vector<8x128xf32> to vector<1x128xf32>
    %133 = vector.shape_cast %132 : vector<1x128xf32> to vector<128xf32>
    %134 = vector.shape_cast %133 : vector<128xf32> to vector<1x128xf32>
    %135 = vector.broadcast %134 : vector<1x128xf32> to vector<8x128xf32>
    %136 = arith.addf %131, %135 : vector<8x128xf32>
    %137 = arith.truncf %136 : vector<8x128xf32> to vector<8x128xbf16>
    %cst_47 = arith.constant 5.000000e-01 : bf16
    %138 = vector.broadcast %cst_47 : bf16 to vector<8x128xbf16>
    %139 = arith.mulf %138, %137 : vector<8x128xbf16>
    %140 = arith.mulf %137, %137 : vector<8x128xbf16>
    %141 = arith.mulf %140, %137 : vector<8x128xbf16>
    %cst_48 = arith.constant 4.467770e-02 : bf16
    %142 = vector.broadcast %cst_48 : bf16 to vector<8x128xbf16>
    %143 = arith.mulf %142, %141 : vector<8x128xbf16>
    %144 = arith.addf %137, %143 : vector<8x128xbf16>
    %cst_49 = arith.constant 7.968750e-01 : bf16
    %145 = vector.broadcast %cst_49 : bf16 to vector<8x128xbf16>
    %146 = arith.mulf %145, %144 : vector<8x128xbf16>
    %147 = math.tanh %146 : vector<8x128xbf16>
    %cst_50 = arith.constant 1.000000e+00 : bf16
    %148 = vector.broadcast %cst_50 : bf16 to vector<8x128xbf16>
    %149 = arith.addf %148, %147 : vector<8x128xbf16>
    %150 = arith.mulf %139, %149 : vector<8x128xbf16>
    %151 = arith.addf %128, %150 : vector<8x128xbf16>
    %c7 = arith.constant 7 : index
    %c0_51 = arith.constant 0 : index
    %c0_52 = arith.constant 0 : index
    %152 = vector.load %arg4[%c7, %c0_51, %c0_52] : memref<8x128x128xbf16, #tpu.memory_space<vmem>>, vector<1x128x128xbf16>
    %153 = vector.shape_cast %152 : vector<1x128x128xbf16> to vector<128x128xbf16>
    %cst_53 = arith.constant dense<0.000000e+00> : vector<8x128xf32>
    %154 = tpu.matmul %151, %153, %cst_53 {dimension_numbers = #tpu.dot_dimension_numbers<[1], [0], [0], [1], [0, 0, 1, 1], [], []>} : vector<8x128xbf16>, vector<128x128xbf16>, vector<8x128xf32> -> vector<8x128xf32>
    %155 = vector.extract_strided_slice %0 {offsets = [7, 0], sizes = [1, 128], strides = [1, 1]} : vector<8x128xf32> to vector<1x128xf32>
    %156 = vector.shape_cast %155 : vector<1x128xf32> to vector<128xf32>
    %157 = vector.shape_cast %156 : vector<128xf32> to vector<1x128xf32>
    %158 = vector.broadcast %157 : vector<1x128xf32> to vector<8x128xf32>
    %159 = arith.addf %154, %158 : vector<8x128xf32>
    %c0_54 = arith.constant 0 : index
    %c0_55 = arith.constant 0 : index
    %160 = vector.load %arg6[%c0_54, %c0_55] : memref<8x128xf32, #tpu.memory_space<vmem>>, vector<8x128xf32>
    tpu.vector_store %arg6[%c0_54, %c0_55], %159 {strides = array<i32>} : memref<8x128xf32, #tpu.memory_space<vmem>>, vector<8x128xf32>,
    return
  }
  func.func @transform_0(%arg0: i32, %arg1: memref<1xi32, #tpu.memory_space<smem>>) -> (i32, i32) {
    %c0_i32 = arith.constant 0 : i32
    %c0_i32_0 = arith.constant 0 : i32
    return %arg0, %c0_i32 : i32, i32
  }
  func.func @transform_1(%arg0: i32, %arg1: memref<1xi32, #tpu.memory_space<smem>>) -> (i32, i32, i32) {
    %c0 = arith.constant 0 : index
    %0 = memref.load %arg1[%c0] : memref<1xi32, #tpu.memory_space<smem>>
    %c0_i32 = arith.constant 0 : i32
    %c0_i32_0 = arith.constant 0 : i32
    %c0_i32_1 = arith.constant 0 : i32
    return %0, %c0_i32, %c0_i32_0 : i32, i32, i32
  }
  func.func @transform_2(%arg0: i32, %arg1: memref<1xi32, #tpu.memory_space<smem>>) -> (i32, i32, i32) {
    %c0_i32 = arith.constant 0 : i32
    %c0_i32_0 = arith.constant 0 : i32
    %c0_i32_1 = arith.constant 0 : i32
    %c0_i32_2 = arith.constant 0 : i32
    return %c0_i32, %c0_i32_0, %c0_i32_1 : i32, i32, i32
  }
  func.func @transform_3(%arg0: i32, %arg1: memref<1xi32, #tpu.memory_space<smem>>) -> (i32, i32) {
    %c0_i32 = arith.constant 0 : i32
    %c0_i32_0 = arith.constant 0 : i32
    %c0_i32_1 = arith.constant 0 : i32
    return %c0_i32, %c0_i32_0 : i32, i32
  }
  func.func @transform_4(%arg0: i32, %arg1: memref<1xi32, #tpu.memory_space<smem>>) -> (i32, i32) {
    %c0_i32 = arith.constant 0 : i32
    %c0_i32_0 = arith.constant 0 : i32
    return %arg0, %c0_i32 : i32, i32
  }
}

</mosaic_0001>

<bundles_post_ra>
// kernel: tpu_custom_call.1
= control target key start
LH: loop header
LB: loop body
LE: loop exit
PB: predicated region body
PF: predicated region fallthrough
CT: control target
= control target key end

     0   :  { %11 = vsyncpa [#allocation5], 0  ;;  %s1703_s0 = inlined_call_operand.<no memory space> [shape: s32[1], index: 0, kind: input, shape index: {}]   ;;  %s1704_s1 = inlined_call_operand.hbm [shape: f32[8,128], index: 1, kind: input, shape index: {}]   ;;  %s1705_s2 = inlined_call_operand.hbm [shape: f32[100,1,128], index: 2, kind: input, shape index: {}]   ;;  %s1706_s3 = inlined_call_operand.hbm [shape: bf16[8,128,128], index: 3, kind: input, shape index: {}]   ;;  %s1707_s4 = inlined_call_operand.vmem [shape: f32[8,128], index: 4, kind: input, shape index: {}]   ;;  %s1708_s5 = inlined_call_operand.hbm [shape: f32[8,128], index: 5, kind: output, shape index: {}]  }
   0x1   :  { %12 = vsyncpa [#allocation8], 0  ;;  %s1032_s20 = sshll.u32 %s1703_s0, 4 }
   0x2   :  { %13 = vsyncpa [#allocation6], 0  ;;  %s31_s23 = scalar_lea.hbm %s1705_s2, %s1032_s20  ;;  %s1510_s24 = smov [#allocation7]  }
   0x3   :  { %s33_s25 = sshll.u32 %s1510_s24, 4  ;;  %s1414_s26 = scalar_lea.hbm %s31_s23, 16  ;;  %s34_s25 = int_to_ptr.vmem [resolvable:$true] %s33_s25 }
   0x4   :  { %p1415_p0 = scmp.ne.s32.totalorder %s31_s23, %s1414_s26  ;;  %s1416_s29 = scalar_lea.hbm %s1705_s2, 1600 }
   0x5   :  { %p1417_p1 = scmp.lt.u32.totalorder %s31_s23, %s1705_s2  ;;  %p1418_p2 = scmp.lt.u32.totalorder %s1416_s29, %s1414_s26 }
   0x6   :  { %p1420_p4 = scmp.lt.u32.totalorder %s1414_s26, %s31_s23 }
   0x7   :  { %p1419_p3 = por %p1418_p2, %p1417_p1 }
   0x9   :  { %p1421_p5 = por %p1420_p4, %p1419_p3 }
   0xb   :  { %p1422_p6 = pnand %p1421_p5, %p1415_p0 }
   0xd   :  { %1425 = shalt.err (!%p1422_p6)
}
   0xe   :  { %s1426_s0 = scalar_lea.vmem %s34_s25, 16  ;;  %s1430_s7 = scalar_lea.vmem %s34_s25, 32 }
   0xf   :  { %p1427_p7 = scmp.ne.s32.totalorder %s34_s25, %s1426_s0  ;;  %p1431_p8 = scmp.lt.s32.totalorder %s34_s25, %s34_s25 }
  0x10   :  { %p1432_p9 = scmp.lt.s32.totalorder %s1430_s7, %s1426_s0 }
  0x12   :  { %p1433_p10 = por %p1432_p9, %p1431_p8 }
  0x14   :  { %p1434_p11 = pnand %p1433_p10, %p1427_p7 }
  0x16   :  { %1437 = shalt.err (!%p1434_p11)
}
  0x17   :  { %36 = dma.hbm_to_vmem [thread:$0]  %s31_s23, 16, %s34_s25, [#allocation8]  }
  0x18   :  { %s1511_s8 = smov [#allocation4]   ;;  %s1512_s10 = smov [#allocation9]  }
  0x19   :  { %s20_s9 = sshll.u32 %s1511_s8, 4  ;;  %s42_s2 = sshll.u32 %s1512_s10, 4  ;;  %s21_s9 = int_to_ptr.vmem [resolvable:$true] %s20_s9  ;;  %s43_s2 = int_to_ptr.vmem [resolvable:$true] %s42_s2 }
  0x1a   :  { %s1438_s13 = scalar_lea.hbm %s1704_s1, 128 }
  0x1b   :  { %p1439_p12 = scmp.ne.s32.totalorder %s1704_s1, %s1438_s13  ;;  %p1442_p13 = scmp.lt.u32.totalorder %s1438_s13, %s1704_s1 }
  0x1d   :  { %p1444_p0 = pnand %p1442_p13, %p1439_p12 }
  0x1f   :  { %1447 = shalt.err (!%p1444_p0)
}
  0x20   :  { %s1448_s18 = scalar_lea.vmem %s21_s9, 128  ;;  %p1453_p2 = scmp.lt.s32.totalorder %s21_s9, %s21_s9 }
  0x21   :  { %p1449_p1 = scmp.ne.s32.totalorder %s21_s9, %s1448_s18  ;;  %p1454_p3 = scmp.lt.s32.totalorder %s1448_s18, %s1448_s18 }
  0x23   :  { %p1455_p4 = por %p1454_p3, %p1453_p2 }
  0x25   :  { %p1456_p5 = pnand %p1455_p4, %p1449_p1 }
  0x27   :  { %1459 = shalt.err (!%p1456_p5)
}
  0x28   :  { %23 = dma.hbm_to_vmem [thread:$0]  %s1704_s1, 128, %s21_s9, [#allocation5]  }
  0x29   :  { %s1460_s23 = scalar_lea.hbm %s1706_s3, 8192 }
  0x2a   :  { %p1461_p6 = scmp.ne.s32.totalorder %s1706_s3, %s1460_s23  ;;  %p1464_p7 = scmp.lt.u32.totalorder %s1460_s23, %s1706_s3 }
  0x2c   :  { %p1466_p8 = pnand %p1464_p7, %p1461_p6 }
  0x2e   :  { %1469 = shalt.err (!%p1466_p8)
}
  0x2f   :  { %s1470_s28 = scalar_lea.vmem %s43_s2, 8192  ;;  %p1475_p10 = scmp.lt.s32.totalorder %s43_s2, %s43_s2 }
  0x30   :  { %p1471_p9 = scmp.ne.s32.totalorder %s43_s2, %s1470_s28  ;;  %p1476_p11 = scmp.lt.s32.totalorder %s1470_s28, %s1470_s28 }
  0x32   :  { %p1477_p12 = por %p1476_p11, %p1475_p10 }
  0x34   :  { %p1478_p13 = pnand %p1477_p12, %p1471_p9 }
  0x36   :  { %1481 = shalt.err (!%p1478_p13)
}
  0x37   :  { %s1513_s1 = smov 64   ;;  %s1514_s29 = smov 4  }
  0x38   :  { %48 = dma.hbm_to_vmem [thread:$0]  %s1706_s3, 8192, %s43_s2, [#allocation8], %s1513_s1, %s1513_s1, %s1514_s29  }
  0x39   :  { %1504 = dma.done.wait [#allocation5], 128  }
  0x3a   :  { %1505 = vsyncadd [#allocation5], 4294967168 }
  0x3b   :  { %1506 = dma.done.wait [#allocation8], 8208  }
  0x3c   :  { %1507 = vsyncadd [#allocation8], 4294959088  ;;  %v1515_v0 = vmov 0.0   ;;  %vm1516_vm0 = vmmov 0   ;;  %v1338_v1 = vld [vmem:[#allocation9] sm:$0xff]   ;;  %v1339_v2 = vld [vmem:[#allocation9 + $0x8] sm:$0xff]   ;;  %v85_v19 = vlaneseq }
  0x3d   :  { %1170 = vmatprep.subr.bf16.mxu0 %v1515_v0  ;;  %1186 = vmatprep.mubr.msk.bf16.mxu0 %vm1516_vm0, %v1515_v0  ;;  %v1340_v3 = vld [vmem:[#allocation9 + $0x10] sm:$0xff]   ;;  %v1341_v4 = vld [vmem:[#allocation9 + $0x18] sm:$0xff]   ;;  %v1342_v5 = vld [vmem:[#allocation9 + $0x20] sm:$0xff]  }
  0x3e   :  { %1190 = vmatprep.subr.bf16.mxu1 %v1515_v0  ;;  %1206 = vmatprep.mubr.msk.bf16.mxu1 %vm1516_vm0, %v1515_v0  ;;  %v1343_v6 = vld [vmem:[#allocation9 + $0x28] sm:$0xff]   ;;  %v1344_v7 = vld [vmem:[#allocation9 + $0x30] sm:$0xff]   ;;  %v1345_v8 = vld [vmem:[#allocation9 + $0x38] sm:$0xff]   ;;  %v1608_v20 = vshrl.u32 %v85_v19, 7 }
  0x3f   :  { %1171 = vmatpush3.bf16.msra.mxu0 %v1338_v1  ;;  %v67_v9 = vld [vmem:[#allocation4] sm:$0xff]  ;;  %v1346_v11 = vld [vmem:[#allocation9 + $0x40] sm:$0xff]   ;;  %v1347_v12 = vld [vmem:[#allocation9 + $0x48] sm:$0xff]  }
  0x40   :  { %1172 = vmatprep.subr.bf16.mxu0 %v1515_v0  ;;  %v68_v10 = vpack.c.bf16 %v67_v9, %v67_v9  ;;  %1191 = vmatpush3.bf16.msra.mxu1 %v1346_v11  ;;  %v1348_v13 = vld [vmem:[#allocation9 + $0x50] sm:$0xff]   ;;  %v1349_v14 = vld [vmem:[#allocation9 + $0x58] sm:$0xff]   ;;  %v1350_v15 = vld [vmem:[#allocation9 + $0x60] sm:$0xff]   ;;  %v87_v21 = vsub.s32 0, %v1608_v20  ;;  %v206_v47 = vsub.s32 1, %v1608_v20 }
  0x41   :  { %1192 = vmatprep.subr.bf16.mxu1 %v1515_v0  ;;  %v1351_v16 = vld [vmem:[#allocation9 + $0x68] sm:$0xff]   ;;  %v1352_v17 = vld [vmem:[#allocation9 + $0x70] sm:$0xff]   ;;  %v1353_v18 = vld [vmem:[#allocation9 + $0x78] sm:$0xff]  }
  0x42   :  { %v1614_v22 = vld [vmem:[%s1707_s4] sm:$0xff]  ;;  %v1354_v39 = vld [vmem:[#allocation9 + $0x80] sm:$0xff]   ;;  %v1355_v40 = vld [vmem:[#allocation9 + $0x88] sm:$0xff]   ;;  %s1517_s4 = smov [#allocation10]  }
  0x43   :  { %1173 = vmatpush3.bf16.msra.mxu0 %v1339_v2  ;;  %v88_v23 = vrot.slane %v1614_v22, %v87_v21  ;;  %v1356_v41 = vld [vmem:[#allocation9 + $0x90] sm:$0xff]   ;;  %v1357_v42 = vld [vmem:[#allocation9 + $0x98] sm:$0xff]   ;;  %v1358_v43 = vld [vmem:[#allocation9 + $0xa0] sm:$0xff]   ;;  %v207_v48 = vrot.slane %v1614_v22, %v206_v47  ;;  %s1020_s7 = sshll.u32 %s1517_s4, 4  ;;  %s1021_s7 = int_to_ptr.vmem [resolvable:$true] %s1020_s7 }
  0x44   :  { %1174 = vmatprep.subr.bf16.mxu0 %v1515_v0  ;;  %1193 = vmatpush3.bf16.msra.mxu1 %v1347_v12  ;;  %v1359_v44 = vld [vmem:[#allocation9 + $0xa8] sm:$0xff]   ;;  %v1360_v45 = vld [vmem:[#allocation9 + $0xb0] sm:$0xff]   ;;  %v1361_v46 = vld [vmem:[#allocation9 + $0xb8] sm:$0xff]   ;;  %s1482_s8 = scalar_lea.vmem %s1021_s7, 128  ;;  %p1487_p1 = scmp.lt.s32.totalorder %s1021_s7, %s1021_s7 }
  0x45   :  { %1194 = vmatprep.subr.bf16.mxu1 %v1515_v0  ;;  %v1362_v2 = vld [vmem:[#allocation9 + $0xc0] sm:$0xff]   ;;  %v1369_v9 = vld [vmem:[#allocation9 + $0xf8] sm:$0xff]   ;;  %v1371_v11 = vld [vmem:[#allocation9 + $0x108] sm:$0xff]   ;;  %p1483_p0 = scmp.ne.s32.totalorder %s1021_s7, %s1482_s8  ;;  %p1488_p2 = scmp.lt.s32.totalorder %s1482_s8, %s1482_s8 }
  0x46   :  { %v1372_v12 = vld [vmem:[#allocation9 + $0x110] sm:$0xff]  }
  0x47   :  { %1175 = vmatpush3.bf16.msra.mxu0 %v1340_v3  ;;  %v1363_v3 = vld [vmem:[#allocation9 + $0xc8] sm:$0xff]   ;;  %p1489_p3 = por %p1488_p2, %p1487_p1 }
  0x48   :  { %1176 = vmatprep.subr.bf16.mxu0 %v1515_v0  ;;  %1195 = vmatpush3.bf16.msra.mxu1 %v1348_v13  ;;  %v1373_v13 = vld [vmem:[#allocation9 + $0x118] sm:$0xff]  }
  0x49   :  { %1196 = vmatprep.subr.bf16.mxu1 %v1515_v0  ;;  %p1490_p4 = pnand %p1489_p3, %p1483_p0 }
  0x4b   :  { %1177 = vmatpush3.bf16.msra.mxu0 %v1341_v4  ;;  %v1364_v4 = vld [vmem:[#allocation9 + $0xd0] sm:$0xff]  }
  0x4c   :  { %1178 = vmatprep.subr.bf16.mxu0 %v1515_v0  ;;  %1197 = vmatpush3.bf16.msra.mxu1 %v1349_v14  ;;  %v1374_v14 = vld [vmem:[#allocation9 + $0x120] sm:$0xff]  }
  0x4d   :  { %1198 = vmatprep.subr.bf16.mxu1 %v1515_v0 }
  0x4f   :  { %1179 = vmatpush3.bf16.msra.mxu0 %v1342_v5  ;;  %v1365_v5 = vld [vmem:[#allocation9 + $0xd8] sm:$0xff]  }
  0x50   :  { %1180 = vmatprep.subr.bf16.mxu0 %v1515_v0  ;;  %1199 = vmatpush3.bf16.msra.mxu1 %v1350_v15  ;;  %v1375_v15 = vld [vmem:[#allocation9 + $0x128] sm:$0xff]  }
  0x51   :  { %1200 = vmatprep.subr.bf16.mxu1 %v1515_v0 }
  0x53   :  { %1181 = vmatpush3.bf16.msra.mxu0 %v1343_v6  ;;  %v1366_v6 = vld [vmem:[#allocation9 + $0xe0] sm:$0xff]  }
  0x54   :  { %1182 = vmatprep.subr.bf16.mxu0 %v1515_v0  ;;  %1201 = vmatpush3.bf16.msra.mxu1 %v1351_v16  ;;  %v326_v16 = vsub.s32 2, %v1608_v20 }
  0x55   :  { %1202 = vmatprep.subr.bf16.mxu1 %v1515_v0 }
  0x57   :  { %1183 = vmatpush3.bf16.msra.mxu0 %v1344_v7  ;;  %v1367_v7 = vld [vmem:[#allocation9 + $0xe8] sm:$0xff]  }
  0x58   :  { %1184 = vmatprep.subr.bf16.mxu0 %v1515_v0  ;;  %1203 = vmatpush3.bf16.msra.mxu1 %v1352_v17  ;;  %v327_v17 = vrot.slane %v1614_v22, %v326_v16  ;;  %v1392_v16 = vld [vmem:[#allocation9 + $0x1b0] sm:$0xff]  }
  0x59   :  { %1204 = vmatprep.subr.bf16.mxu1 %v1515_v0 }
  0x5b   :  { %1185 = vmatpush3.bf16.msra.mxu0 %v1345_v8  ;;  %v1368_v8 = vld [vmem:[#allocation9 + $0xf0] sm:$0xff]  }
  0x5c   :  { %1210 = vmatprep.subr.bf16.mxu0 %v1515_v0  ;;  %1205 = vmatpush3.bf16.msra.mxu1 %v1353_v18 }
  0x5d   :  { %1230 = vmatprep.subr.bf16.mxu1 %v1515_v0 }
  0x5e   :  { %1187 = vmatmul.mubr.bf16.vlgmr.msra.gmra.mrb[0].mxu0 %v68_v10  ;;  %v1370_v10 = vld [vmem:[#allocation9 + $0x100] sm:$0xff]  }
  0x5f   :  { %1226 = vmatprep.mubr.msk.bf16.mxu0 %vm1516_vm0, %v1515_v0  ;;  %1211 = vmatpush3.bf16.msra.mxu0 %v1354_v39 }
  0x60   :  { %1212 = vmatprep.subr.bf16.mxu0 %v1515_v0 }
  0x63   :  { %1213 = vmatpush3.bf16.msra.mxu0 %v1355_v40 }
  0x64   :  { %1214 = vmatprep.subr.bf16.mxu0 %v1515_v0 }
  0x67   :  { %1215 = vmatpush3.bf16.msra.mxu0 %v1356_v41  ;;  %v1065_v41 = vld [vmem:[#allocation7] ss:$0 sm:$0xff] }
  0x68   :  { %1216 = vmatprep.subr.bf16.mxu0 %v1515_v0 }
  0x6b   :  { %1217 = vmatpush3.bf16.msra.mxu0 %v1357_v42 }
  0x6c   :  { %1218 = vmatprep.subr.bf16.mxu0 %v1515_v0 }
  0x6f   :  { %1219 = vmatpush3.bf16.msra.mxu0 %v1358_v43 }
  0x70   :  { %1220 = vmatprep.subr.bf16.mxu0 %v1515_v0 }
  0x73   :  { %1221 = vmatpush3.bf16.msra.mxu0 %v1359_v44 }
  0x74   :  { %1222 = vmatprep.subr.bf16.mxu0 %v1515_v0 }
  0x77   :  { %1223 = vmatpush3.bf16.msra.mxu0 %v1360_v45 }
  0x78   :  { %1224 = vmatprep.subr.bf16.mxu0 %v1515_v0 }
  0x7b   :  { %1225 = vmatpush3.bf16.msra.mxu0 %v1361_v46 }
  0x7c   :  { %1250 = vmatprep.subr.bf16.mxu0 %v1515_v0 }
 0x131   :  { %v171_v24 = vpop.f32.mrb[0].mxu0 }
 0x132   :  { %v172_v25 = vadd.f32 %v171_v24, %v88_v23  ;;  %v1188_v26 = vpop.f32.mrb[1].mxu0 }
 0x133   :  { %v174_v27 = vpop.f32.mrb[2].mxu0 }
 0x134   :  { %v177_v28 = vpack.c.bf16 %v172_v25, %v172_v25  ;;  %v1189_v29 = vpop.f32.mrb[3].mxu0 }
 0x136   :  { %v179_v30 = vmul.bf16 %v177_v28, %v177_v28  ;;  %v178_v36 = vmul.bf16 1056980736, %v177_v28 }
 0x138   :  { %v180_v31 = vmul.bf16 %v179_v30, %v177_v28 }
 0x13a   :  { %v181_v32 = vmul.bf16 1027030327, %v180_v31 }
 0x13c   :  { %v182_v33 = vadd.bf16 %v181_v32, %v177_v28 }
 0x13e   :  { %v183_v34 = vmul.bf16 1061961548, %v182_v33 }
 0x140   :  { %1402 = vtanh.bf16 %v183_v34 }
 0x14b   :  { %v1403_v35 = vpop.eup %1402 }
 0x14c   :  { %v185_v37 = vadd.bf16 1065369472, %v1403_v35 }
 0x14e   :  { %v186_v38 = vmul.bf16 %v185_v37, %v178_v36  ;;  %v1376_v36 = vld [vmem:[#allocation9 + $0x130] sm:$0xff]   ;;  %v1377_v37 = vld [vmem:[#allocation9 + $0x138] sm:$0xff]  }
 0x150   :  { %1207 = vmatmul.mubr.bf16.vlgmr.msra.gmra.mrb[0].mxu1 %v186_v38 }
 0x151   :  { %1246 = vmatprep.mubr.msk.bf16.mxu1 %vm1516_vm0, %v1515_v0  ;;  %1231 = vmatpush3.bf16.msra.mxu1 %v1362_v2 }
 0x152   :  { %1232 = vmatprep.subr.bf16.mxu1 %v1515_v0 }
 0x155   :  { %1233 = vmatpush3.bf16.msra.mxu1 %v1363_v3 }
 0x156   :  { %1234 = vmatprep.subr.bf16.mxu1 %v1515_v0 }
 0x159   :  { %1235 = vmatpush3.bf16.msra.mxu1 %v1364_v4 }
 0x15a   :  { %1236 = vmatprep.subr.bf16.mxu1 %v1515_v0 }
 0x15d   :  { %1237 = vmatpush3.bf16.msra.mxu1 %v1365_v5 }
 0x15e   :  { %1238 = vmatprep.subr.bf16.mxu1 %v1515_v0 }
 0x161   :  { %1239 = vmatpush3.bf16.msra.mxu1 %v1366_v6 }
 0x162   :  { %1240 = vmatprep.subr.bf16.mxu1 %v1515_v0 }
 0x165   :  { %1241 = vmatpush3.bf16.msra.mxu1 %v1367_v7 }
 0x166   :  { %1242 = vmatprep.subr.bf16.mxu1 %v1515_v0 }
 0x169   :  { %1243 = vmatpush3.bf16.msra.mxu1 %v1368_v8 }
 0x16a   :  { %1244 = vmatprep.subr.bf16.mxu1 %v1515_v0 }
 0x16d   :  { %1245 = vmatpush3.bf16.msra.mxu1 %v1369_v9 }
 0x16e   :  { %1270 = vmatprep.subr.bf16.mxu1 %v1515_v0 }
 0x223   :  { %v290_v49 = vpop.f32.mrb[0].mxu1 }
 0x224   :  { %v291_v50 = vadd.f32 %v290_v49, %v207_v48  ;;  %v1208_v51 = vpop.f32.mrb[1].mxu1  ;;  %v1378_v48 = vld [vmem:[#allocation9 + $0x140] sm:$0xff]   ;;  %v1379_v49 = vld [vmem:[#allocation9 + $0x148] sm:$0xff]  }
 0x225   :  { %v293_v52 = vpop.f32.mrb[2].mxu1  ;;  %v1381_v51 = vld [vmem:[#allocation9 + $0x158] sm:$0xff]  }
 0x226   :  { %v296_v53 = vpack.c.bf16 %v291_v50, %v291_v50  ;;  %v1209_v54 = vpop.f32.mrb[3].mxu1  ;;  %v1380_v50 = vld [vmem:[#allocation9 + $0x150] sm:$0xff]   ;;  %v1382_v52 = vld [vmem:[#allocation9 + $0x160] sm:$0xff]  }
 0x227   :  { %v1384_v54 = vld [vmem:[#allocation9 + $0x170] sm:$0xff]  }
 0x228   :  { %v298_v55 = vmul.bf16 %v296_v53, %v296_v53  ;;  %v297_v61 = vmul.bf16 1056980736, %v296_v53 }
 0x22a   :  { %v299_v56 = vmul.bf16 %v298_v55, %v296_v53  ;;  %v1385_v55 = vld [vmem:[#allocation9 + $0x178] sm:$0xff]  }
 0x22c   :  { %v300_v57 = vmul.bf16 1027030327, %v299_v56  ;;  %v564_v56 = vsub.s32 4, %v1608_v20 }
 0x22e   :  { %v301_v58 = vadd.bf16 %v300_v57, %v296_v53  ;;  %v1383_v53 = vld [vmem:[#allocation9 + $0x168] sm:$0xff]   ;;  %v565_v57 = vrot.slane %v1614_v22, %v564_v56 }
 0x230   :  { %v302_v59 = vmul.bf16 1061961548, %v301_v58 }
 0x232   :  { %1404 = vtanh.bf16 %v302_v59 }
 0x23d   :  { %v1405_v60 = vpop.eup %1404 }
 0x23e   :  { %v304_v62 = vadd.bf16 1065369472, %v1405_v60 }
 0x240   :  { %v305_v63 = vmul.bf16 %v304_v62, %v297_v61 }
 0x242   :  { %v1629_v1 = vadd.bf16 %v305_v63, %v186_v38  ;;  %v446_v38 = vsub.s32 3, %v1608_v20 }
 0x244   :  { %1227 = vmatmul.mubr.bf16.vlgmr.msra.gmra.mrb[4].mxu0 %v1629_v1  ;;  %v447_v39 = vrot.slane %v1614_v22, %v446_v38  ;;  %v1394_v38 = vld [vmem:[#allocation9 + $0x1c0] sm:$0xff]  }
 0x245   :  { %1266 = vmatprep.mubr.msk.bf16.mxu0 %vm1516_vm0, %v1515_v0  ;;  %1251 = vmatpush3.bf16.msra.mxu0 %v1370_v10  ;;  %v1386_v10 = vld [vmem:[#allocation9 + $0x180] sm:$0xff]  }
 0x246   :  { %1252 = vmatprep.subr.bf16.mxu0 %v1515_v0 }
 0x249   :  { %1253 = vmatpush3.bf16.msra.mxu0 %v1371_v11  ;;  %v1387_v11 = vld [vmem:[#allocation9 + $0x188] sm:$0xff]  }
 0x24a   :  { %1254 = vmatprep.subr.bf16.mxu0 %v1515_v0 }
 0x24d   :  { %1255 = vmatpush3.bf16.msra.mxu0 %v1372_v12  ;;  %v1388_v12 = vld [vmem:[#allocation9 + $0x190] sm:$0xff]  }
 0x24e   :  { %1256 = vmatprep.subr.bf16.mxu0 %v1515_v0 }
 0x251   :  { %1257 = vmatpush3.bf16.msra.mxu0 %v1373_v13  ;;  %v1389_v13 = vld [vmem:[#allocation9 + $0x198] sm:$0xff]  }
 0x252   :  { %1258 = vmatprep.subr.bf16.mxu0 %v1515_v0 }
 0x255   :  { %1259 = vmatpush3.bf16.msra.mxu0 %v1374_v14  ;;  %v1390_v14 = vld [vmem:[#allocation9 + $0x1a0] sm:$0xff]  }
 0x256   :  { %1260 = vmatprep.subr.bf16.mxu0 %v1515_v0 }
 0x259   :  { %1261 = vmatpush3.bf16.msra.mxu0 %v1375_v15  ;;  %v1391_v15 = vld [vmem:[#allocation9 + $0x1a8] sm:$0xff]  }
 0x25a   :  { %1262 = vmatprep.subr.bf16.mxu0 %v1515_v0 }
 0x25d   :  { %1263 = vmatpush3.bf16.msra.mxu0 %v1376_v36 }
 0x25e   :  { %1264 = vmatprep.subr.bf16.mxu0 %v1515_v0 }
 0x261   :  { %1265 = vmatpush3.bf16.msra.mxu0 %v1377_v37 }
 0x262   :  { %1290 = vmatprep.subr.bf16.mxu0 %v1515_v0 }
 0x317   :  { %v410_v18 = vpop.f32.mrb[4].mxu0 }
 0x318   :  { %v411_v19 = vadd.f32 %v410_v18, %v327_v17  ;;  %v1228_v21 = vpop.f32.mrb[5].mxu0  ;;  %v1393_v17 = vld [vmem:[#allocation9 + $0x1b8] sm:$0xff]   ;;  %v683_v18 = vsub.s32 5, %v1608_v20 }
 0x319   :  { %v413_v23 = vpop.f32.mrb[6].mxu0 }
 0x31a   :  { %v416_v24 = vpack.c.bf16 %v411_v19, %v411_v19  ;;  %v1229_v25 = vpop.f32.mrb[7].mxu0  ;;  %v684_v19 = vrot.slane %v1614_v22, %v683_v18 }
 0x31c   :  { %v418_v26 = vmul.bf16 %v416_v24, %v416_v24  ;;  %v417_v32 = vmul.bf16 1056980736, %v416_v24 }
 0x31e   :  { %v419_v27 = vmul.bf16 %v418_v26, %v416_v24 }
 0x320   :  { %v420_v28 = vmul.bf16 1027030327, %v419_v27 }
 0x322   :  { %v421_v29 = vadd.bf16 %v420_v28, %v416_v24 }
 0x324   :  { %v422_v30 = vmul.bf16 1061961548, %v421_v29 }
 0x326   :  { %1406 = vtanh.bf16 %v422_v30 }
 0x331   :  { %v1407_v31 = vpop.eup %1406 }
 0x332   :  { %v424_v33 = vadd.bf16 1065369472, %v1407_v31 }
 0x334   :  { %v425_v34 = vmul.bf16 %v424_v33, %v417_v32 }
 0x336   :  { %v426_v35 = vadd.bf16 %v425_v34, %v1629_v1 }
 0x338   :  { %1247 = vmatmul.mubr.bf16.vlgmr.msra.gmra.mrb[4].mxu1 %v426_v35 }
 0x339   :  { %1286 = vmatprep.mubr.msk.bf16.mxu1 %vm1516_vm0, %v1515_v0  ;;  %1271 = vmatpush3.bf16.msra.mxu1 %v1378_v48 }
 0x33a   :  { %1272 = vmatprep.subr.bf16.mxu1 %v1515_v0 }
 0x33d   :  { %1273 = vmatpush3.bf16.msra.mxu1 %v1379_v49 }
 0x33e   :  { %1274 = vmatprep.subr.bf16.mxu1 %v1515_v0 }
 0x341   :  { %1275 = vmatpush3.bf16.msra.mxu1 %v1380_v50 }
 0x342   :  { %1276 = vmatprep.subr.bf16.mxu1 %v1515_v0 }
 0x345   :  { %1277 = vmatpush3.bf16.msra.mxu1 %v1381_v51 }
 0x346   :  { %1278 = vmatprep.subr.bf16.mxu1 %v1515_v0 }
 0x349   :  { %1279 = vmatpush3.bf16.msra.mxu1 %v1382_v52 }
 0x34a   :  { %1280 = vmatprep.subr.bf16.mxu1 %v1515_v0 }
 0x34d   :  { %1281 = vmatpush3.bf16.msra.mxu1 %v1383_v53 }
 0x34e   :  { %1282 = vmatprep.subr.bf16.mxu1 %v1515_v0 }
 0x351   :  { %1283 = vmatpush3.bf16.msra.mxu1 %v1384_v54 }
 0x352   :  { %1284 = vmatprep.subr.bf16.mxu1 %v1515_v0 }
 0x355   :  { %1285 = vmatpush3.bf16.msra.mxu1 %v1385_v55 }
 0x356   :  { %1310 = vmatprep.subr.bf16.mxu1 %v1515_v0 }
 0x40b   :  { %v530_v40 = vpop.f32.mrb[4].mxu1 }
 0x40c   :  { %v531_v42 = vadd.f32 %v530_v40, %v447_v39  ;;  %v1248_v43 = vpop.f32.mrb[5].mxu1  ;;  %v1395_v39 = vld [vmem:[#allocation9 + $0x1c8] sm:$0xff]   ;;  %v1396_v40 = vld [vmem:[#allocation9 + $0x1d0] sm:$0xff]  }
 0x40d   :  { %v533_v44 = vpop.f32.mrb[6].mxu1  ;;  %v1399_v43 = vld [vmem:[#allocation9 + $0x1e8] sm:$0xff]  }
 0x40e   :  { %v543_v45 = vadd.f32 %v1065_v41, %v531_v42  ;;  %v1249_v46 = vpop.f32.mrb[7].mxu1  ;;  %v1397_v41 = vld [vmem:[#allocation9 + $0x1d8] sm:$0xff]   ;;  %v1398_v42 = vld [vmem:[#allocation9 + $0x1e0] sm:$0xff]   ;;  %v1400_v44 = vld [vmem:[#allocation9 + $0x1f0] sm:$0xff]  }
 0x40f   :  { %v803_v46 = vsub.s32 6, %v1608_v20 }
 0x410   :  { %v544_v47 = vpack.c.bf16 %v543_v45, %v543_v45  ;;  %v1401_v45 = vld [vmem:[#allocation9 + $0x1f8] sm:$0xff]  }
 0x412   :  { %1267 = vmatmul.mubr.bf16.vlgmr.msra.gmra.mrb[8].mxu0 %v544_v47  ;;  %v804_v47 = vrot.slane %v1614_v22, %v803_v46 }
 0x413   :  { %1306 = vmatprep.mubr.msk.bf16.mxu0 %vm1516_vm0, %v1515_v0  ;;  %1291 = vmatpush3.bf16.msra.mxu0 %v1386_v10 }
 0x414   :  { %1292 = vmatprep.subr.bf16.mxu0 %v1515_v0 }
 0x417   :  { %1293 = vmatpush3.bf16.msra.mxu0 %v1387_v11 }
 0x418   :  { %1294 = vmatprep.subr.bf16.mxu0 %v1515_v0 }
 0x41b   :  { %1295 = vmatpush3.bf16.msra.mxu0 %v1388_v12 }
 0x41c   :  { %1296 = vmatprep.subr.bf16.mxu0 %v1515_v0 }
 0x41f   :  { %1297 = vmatpush3.bf16.msra.mxu0 %v1389_v13 }
 0x420   :  { %1298 = vmatprep.subr.bf16.mxu0 %v1515_v0 }
 0x423   :  { %1299 = vmatpush3.bf16.msra.mxu0 %v1390_v14 }
 0x424   :  { %1300 = vmatprep.subr.bf16.mxu0 %v1515_v0 }
 0x427   :  { %1301 = vmatpush3.bf16.msra.mxu0 %v1391_v15 }
 0x428   :  { %1302 = vmatprep.subr.bf16.mxu0 %v1515_v0 }
 0x42b   :  { %1303 = vmatpush3.bf16.msra.mxu0 %v1392_v16 }
 0x42c   :  { %1304 = vmatprep.subr.bf16.mxu0 %v1515_v0 }
 0x42f   :  { %1305 = vmatpush3.bf16.msra.mxu0 %v1393_v17 }
 0x4e5   :  { %v648_v58 = vpop.f32.mrb[8].mxu0 }
 0x4e6   :  { %v649_v59 = vadd.f32 %v648_v58, %v565_v57  ;;  %v1268_v60 = vpop.f32.mrb[9].mxu0 }
 0x4e7   :  { %v651_v61 = vpop.f32.mrb[10].mxu0 }
 0x4e8   :  { %v654_v62 = vpack.c.bf16 %v649_v59, %v649_v59  ;;  %v1269_v63 = vpop.f32.mrb[11].mxu0 }
 0x4e9   :  { %v923_v63 = vsub.s32 7, %v1608_v20 }
 0x4ea   :  { %v656_v1 = vmul.bf16 %v654_v62, %v654_v62  ;;  %v655_v7 = vmul.bf16 1056980736, %v654_v62 }
 0x4ec   :  { %v657_v2 = vmul.bf16 %v656_v1, %v654_v62  ;;  %v924_v1 = vrot.slane %v1614_v22, %v923_v63 }
 0x4ee   :  { %v658_v3 = vmul.bf16 1027030327, %v657_v2 }
 0x4f0   :  { %v659_v4 = vadd.bf16 %v658_v3, %v654_v62 }
 0x4f2   :  { %v660_v5 = vmul.bf16 1061961548, %v659_v4 }
 0x4f4   :  { %1408 = vtanh.bf16 %v660_v5 }
 0x4ff   :  { %v1409_v6 = vpop.eup %1408 }
 0x500   :  { %v662_v8 = vadd.bf16 1065369472, %v1409_v6 }
 0x502   :  { %v663_v9 = vmul.bf16 %v662_v8, %v655_v7 }
 0x504   :  { %1287 = vmatmul.mubr.bf16.vlgmr.msra.gmra.mrb[8].mxu1 %v663_v9 }
 0x505   :  { %1326 = vmatprep.mubr.msk.bf16.mxu1 %vm1516_vm0, %v1515_v0  ;;  %1311 = vmatpush3.bf16.msra.mxu1 %v1394_v38 }
 0x506   :  { %1312 = vmatprep.subr.bf16.mxu1 %v1515_v0 }
 0x509   :  { %1313 = vmatpush3.bf16.msra.mxu1 %v1395_v39 }
 0x50a   :  { %1314 = vmatprep.subr.bf16.mxu1 %v1515_v0 }
 0x50d   :  { %1315 = vmatpush3.bf16.msra.mxu1 %v1396_v40 }
 0x50e   :  { %1316 = vmatprep.subr.bf16.mxu1 %v1515_v0 }
 0x511   :  { %1317 = vmatpush3.bf16.msra.mxu1 %v1397_v41 }
 0x512   :  { %1318 = vmatprep.subr.bf16.mxu1 %v1515_v0 }
 0x515   :  { %1319 = vmatpush3.bf16.msra.mxu1 %v1398_v42 }
 0x516   :  { %1320 = vmatprep.subr.bf16.mxu1 %v1515_v0 }
 0x519   :  { %1321 = vmatpush3.bf16.msra.mxu1 %v1399_v43 }
 0x51a   :  { %1322 = vmatprep.subr.bf16.mxu1 %v1515_v0 }
 0x51d   :  { %1323 = vmatpush3.bf16.msra.mxu1 %v1400_v44 }
 0x51e   :  { %1324 = vmatprep.subr.bf16.mxu1 %v1515_v0 }
 0x521   :  { %1325 = vmatpush3.bf16.msra.mxu1 %v1401_v45 }
 0x5d7   :  { %v767_v21 = vpop.f32.mrb[8].mxu1 }
 0x5d8   :  { %v768_v23 = vadd.f32 %v767_v21, %v684_v19  ;;  %v1288_v24 = vpop.f32.mrb[9].mxu1 }
 0x5d9   :  { %v770_v25 = vpop.f32.mrb[10].mxu1 }
 0x5da   :  { %v773_v26 = vpack.c.bf16 %v768_v23, %v768_v23  ;;  %v1289_v27 = vpop.f32.mrb[11].mxu1 }
 0x5dc   :  { %v775_v28 = vmul.bf16 %v773_v26, %v773_v26  ;;  %v774_v34 = vmul.bf16 1056980736, %v773_v26 }
 0x5de   :  { %v776_v29 = vmul.bf16 %v775_v28, %v773_v26 }
 0x5e0   :  { %v777_v30 = vmul.bf16 1027030327, %v776_v29 }
 0x5e2   :  { %v778_v31 = vadd.bf16 %v777_v30, %v773_v26 }
 0x5e4   :  { %v779_v32 = vmul.bf16 1061961548, %v778_v31 }
 0x5e6   :  { %1410 = vtanh.bf16 %v779_v32 }
 0x5f1   :  { %v1411_v33 = vpop.eup %1410 }
 0x5f2   :  { %v781_v35 = vadd.bf16 1065369472, %v1411_v33 }
 0x5f4   :  { %v782_v36 = vmul.bf16 %v781_v35, %v774_v34 }
 0x5f6   :  { %v783_v37 = vadd.bf16 %v782_v36, %v663_v9 }
 0x5f8   :  { %1307 = vmatmul.mubr.bf16.vlgmr.msra.gmra.mrb[12].mxu0 %v783_v37 }
 0x6cb   :  { %v887_v48 = vpop.f32.mrb[12].mxu0 }
 0x6cc   :  { %v888_v49 = vadd.f32 %v887_v48, %v804_v47  ;;  %v1308_v50 = vpop.f32.mrb[13].mxu0 }
 0x6cd   :  { %v890_v51 = vpop.f32.mrb[14].mxu0 }
 0x6ce   :  { %v893_v52 = vpack.c.bf16 %v888_v49, %v888_v49  ;;  %v1309_v53 = vpop.f32.mrb[15].mxu0 }
 0x6d0   :  { %v895_v54 = vmul.bf16 %v893_v52, %v893_v52  ;;  %v894_v60 = vmul.bf16 1056980736, %v893_v52 }
 0x6d2   :  { %v896_v55 = vmul.bf16 %v895_v54, %v893_v52 }
 0x6d4   :  { %v897_v56 = vmul.bf16 1027030327, %v896_v55 }
 0x6d6   :  { %v898_v57 = vadd.bf16 %v897_v56, %v893_v52 }
 0x6d8   :  { %v899_v58 = vmul.bf16 1061961548, %v898_v57 }
 0x6da   :  { %1412 = vtanh.bf16 %v899_v58 }
 0x6e5   :  { %v1413_v59 = vpop.eup %1412 }
 0x6e6   :  { %v901_v0 = vadd.bf16 1065369472, %v1413_v59 }
 0x6e8   :  { %v902_v61 = vmul.bf16 %v901_v0, %v894_v60 }
 0x6ea   :  { %v903_v62 = vadd.bf16 %v902_v61, %v783_v37 }
 0x6ec   :  { %1327 = vmatmul.mubr.bf16.vlgmr.msra.gmra.mrb[12].mxu1 %v903_v62 }
 0x7bf   :  { %v1007_v2 = vpop.f32.mrb[12].mxu1 }
 0x7c0   :  { %v1008_v3 = vadd.f32 %v1007_v2, %v924_v1  ;;  %v1328_v4 = vpop.f32.mrb[13].mxu1 }
 0x7c1   :  { %v1010_v5 = vpop.f32.mrb[14].mxu1 }
 0x7c2   :  { %1013 = vst [vmem:[#allocation10] sm:$0xff] %v1008_v3  ;;  %v1329_v6 = vpop.f32.mrb[15].mxu1 }
 0x7c3   :  { %1493 = shalt.err (!%p1490_p4)
}
 0x7c4   :  { %s1494_s2 = scalar_lea.hbm %s1708_s5, 128 }
 0x7c5   :  { %p1495_p5 = scmp.ne.s32.totalorder %s1708_s5, %s1494_s2  ;;  %p1498_p6 = scmp.lt.u32.totalorder %s1494_s2, %s1708_s5 }
 0x7c7   :  { %p1500_p7 = pnand %p1498_p6, %p1495_p5 }
 0x7c9   :  { %1503 = shalt.err (!%p1500_p7)
}
 0x7ca   :  { %1023 = dma.vmem_to_hbm [thread:$0]  %s1021_s7, 128, %s1708_s5, [#allocation6]  }
 0x7cb   :  { %1508 = dma.done.wait [#allocation6], 128  }
 0x7cc   :  { %1509 = vsyncadd [#allocation6], 4294967168 }
 0x7cd   :  { %1027 = vsyncpa [#allocation5], 1 }
 0x7ce   :  { %1028 = vsyncpa [#allocation8], 1 }
 0x7cf   :  { %1029 = vsyncpa [#allocation6], 1 }

</bundles_post_ra>
